<compile_context>
chip_gen: v7x
topology: tpu7x:2x2x1
jax: 0.10.0
libtpu: 0.0.40
codegen_flags: <defaults>
</compile_context>

<pallas_src>
import jax
import jax.numpy as jnp
from jax.experimental import pallas as pl
from jax.experimental.pallas import tpu as pltpu


_LANE = 512           # lane-dense width (multiple of 128)
_MAX_TILE_ROWS = 512  # up to 512x512 f32 out block ~= 1 MiB per buffer
_ROW_ALIGN = 32       # sublane alignment covering f32 / bf16 / int8 packing


def _round_up(x, m):
    return ((x + m - 1) // m) * m


def _cast_kernel(x_ref, o_ref):
    # elementwise cast to float32 (pure bandwidth-bound copy/convert)
    o_ref[...] = x_ref[...].astype(jnp.float32)


def feature_network_forward(state, action=None):
    """JAX/Pallas equivalent of FeatureNetwork.forward.

    state: (B, 1, H, W) array of any dtype.
    returns: (B, H, W) float32 array (== torch.squeeze(state, 1).float()).
    """
    assert state.ndim == 4 and state.shape[1] == 1, (
        "expected NCHW input with a size-1 channel dim to squeeze"
    )
    B, _, H, W = state.shape
    total = B * H * W

    # --- layout plumbing (metadata-only except for the small pad) -----------
    rows = -(-total // _LANE)  # ceil
    if rows >= _MAX_TILE_ROWS:
        tile_rows = _MAX_TILE_ROWS
    else:
        tile_rows = _round_up(rows, _ROW_ALIGN)
    rows_padded = _round_up(rows, tile_rows)
    padded_total = rows_padded * _LANE

    flat = state.reshape(total)
    if padded_total != total:
        flat = jnp.pad(flat, (0, padded_total - total))
    x2d = flat.reshape(rows_padded, _LANE)

    num_steps = rows_padded // tile_rows

    out2d = pl.pallas_call(
        _cast_kernel,
        out_shape=jax.ShapeDtypeStruct((rows_padded, _LANE), jnp.float32),
        grid_spec=pltpu.PrefetchScalarGridSpec(
            num_scalar_prefetch=0,
            grid=(num_steps,),
            in_specs=[pl.BlockSpec((tile_rows, _LANE), lambda i: (i, 0))],
            out_specs=pl.BlockSpec((tile_rows, _LANE), lambda i: (i, 0)),
        ),
        compiler_params=pltpu.CompilerParams(
            dimension_semantics=("parallel",),
            # explicit, conservative VMEM budget (fits v7x's 64 MiB easily:
            # worst case ~ (1 MiB in + 1 MiB out) * 2 buffers each = 4 MiB)
            vmem_limit_bytes=32 * 1024 * 1024,
        ),
    )(x2d)

    # undo the padding / reshape glue
    out = out2d.reshape(padded_total)[:total].reshape(B, H, W)
    return out


if __name__ == "__main__":
    key = jax.random.PRNGKey(0)
    B, C, H, W = 2, 1, 16, 16  # NCHW with squeezable channel dim
    # bfloat16 input so the float() cast in the kernel is meaningful
    state = jax.random.normal(key, (B, C, H, W), dtype=jnp.bfloat16)

    out = feature_network_forward(state)
    out = jax.block_until_ready(out)

    # reference check: squeeze(dim=1) + cast to float32
    ref = state.reshape(B, H, W).astype(jnp.float32)
    assert out.shape == (B, H, W)
    assert out.dtype == jnp.float32
    assert jnp.allclose(out, ref)

    print("KERNEL_OK")
</pallas_src>

<mosaic_0001>
module attributes {stable_mosaic.version = 11 : i64} {
  func.func @_cast_kernel(%arg0: i32, %arg1: memref<32x512xbf16, #tpu.memory_space<vmem>>, %arg2: memref<32x512xf32, #tpu.memory_space<vmem>>) attributes {dimension_semantics = [#tpu.dimension_semantics<parallel>], iteration_bounds = array<i64: 1>, scalar_prefetch = 0 : i64, scratch_operands = 0 : i64, tpu.core_type = #tpu.core_type<tc>, window_params = [{transform_indices = @transform_0, window_bounds = array<i64: 32, 512>}, {transform_indices = @transform_1, window_bounds = array<i64: 32, 512>}]} {
    %c0 = arith.constant 0 : index
    %c0_0 = arith.constant 0 : index
    %0 = vector.load %arg1[%c0, %c0_0] : memref<32x512xbf16, #tpu.memory_space<vmem>>, vector<32x512xbf16>
    %1 = arith.extf %0 : vector<32x512xbf16> to vector<32x512xf32>
    %c0_1 = arith.constant 0 : index
    %c0_2 = arith.constant 0 : index
    %2 = vector.load %arg2[%c0_1, %c0_2] : memref<32x512xf32, #tpu.memory_space<vmem>>, vector<32x512xf32>
    tpu.vector_store %arg2[%c0_1, %c0_2], %1 {strides = array<i32>} : memref<32x512xf32, #tpu.memory_space<vmem>>, vector<32x512xf32>,
    return
  }
  func.func @transform_0(%arg0: i32) -> (i32, i32) {
    %c0_i32 = arith.constant 0 : i32
    %c0_i32_0 = arith.constant 0 : i32
    return %arg0, %c0_i32 : i32, i32
  }
  func.func @transform_1(%arg0: i32) -> (i32, i32) {
    %c0_i32 = arith.constant 0 : i32
    %c0_i32_0 = arith.constant 0 : i32
    return %arg0, %c0_i32 : i32, i32
  }
}

</mosaic_0001>

<bundles_post_ra>
// kernel: tpu_custom_call.1
= control target key start
LH: loop header
LB: loop body
LE: loop exit
PB: predicated region body
PF: predicated region fallthrough
CT: control target
= control target key end

     0   :  { %6 = vsyncpa [#allocation3], 0  ;;  %s174_s0 = inlined_call_operand.hbm [shape: bf16[32,512], index: 0, kind: input, shape index: {}]   ;;  %s175_s1 = inlined_call_operand.hbm [shape: f32[32,512], index: 1, kind: output, shape index: {}]  }
   0x1   :  { %7 = vsyncpa [#allocation4], 0  ;;  %s134_s6 = smov [#allocation2]   ;;  %s86_s10 = scalar_lea.hbm %s174_s0, 1024 }
   0x2   :  { %s13_s7 = sshll.u32 %s134_s6, 4  ;;  %p87_p0 = scmp.ne.s32.totalorder %s174_s0, %s86_s10  ;;  %s14_s7 = int_to_ptr.vmem [resolvable:$true] %s13_s7 }
   0x3   :  { %p90_p1 = scmp.lt.u32.totalorder %s86_s10, %s174_s0 }
   0x5   :  { %p92_p2 = pnand %p90_p1, %p87_p0 }
   0x7   :  { %95 = shalt.err (!%p92_p2)
}
   0x8   :  { %s96_s15 = scalar_lea.vmem %s14_s7, 1024  ;;  %p101_p4 = scmp.lt.s32.totalorder %s14_s7, %s14_s7 }
   0x9   :  { %p97_p3 = scmp.ne.s32.totalorder %s14_s7, %s96_s15  ;;  %p102_p5 = scmp.lt.s32.totalorder %s96_s15, %s96_s15 }
   0xb   :  { %p103_p6 = por %p102_p5, %p101_p4 }
   0xd   :  { %p104_p7 = pnand %p103_p6, %p97_p3 }
   0xf   :  { %107 = shalt.err (!%p104_p7)
}
  0x10   :  { %s135_s16 = smov 256   ;;  %s136_s17 = smov 16  }
  0x11   :  { %19 = dma.hbm_to_vmem [thread:$0]  %s174_s0, 1024, %s14_s7, [#allocation3], %s135_s16, %s135_s16, %s136_s17  }
  0x12   :  { %130 = dma.done.wait [#allocation3], 1024  }
  0x13   :  { %131 = vsyncadd [#allocation3], 4294966272  ;;  %v23_v0 = vld [vmem:[#allocation2] sm:$0xff]  ;;  %v24_v1 = vld [vmem:[#allocation2 + $0x8] sm:$0xff]  ;;  %s137_s20 = smov [#allocation5]  }
  0x14   :  { %v25_v2 = vld [vmem:[#allocation2 + $0x10] sm:$0xff]  ;;  %v31_v3 = vunpack.c.l.bf16 %v23_v0  ;;  %v32_v4 = vunpack.c.h.bf16 %v23_v0  ;;  %v33_v5 = vunpack.c.l.bf16 %v24_v1  ;;  %v34_v6 = vunpack.c.h.bf16 %v24_v1  ;;  %v26_v7 = vld [vmem:[#allocation2 + $0x18] sm:$0xff]  ;;  %v27_v8 = vld [vmem:[#allocation2 + $0x20] sm:$0xff]  ;;  %s68_s21 = sshll.u32 %s137_s20, 4  ;;  %s69_s21 = int_to_ptr.vmem [resolvable:$true] %s68_s21 }
  0x15   :  { %v28_v9 = vld [vmem:[#allocation2 + $0x28] sm:$0xff]  ;;  %v35_v10 = vunpack.c.l.bf16 %v25_v2  ;;  %v36_v11 = vunpack.c.h.bf16 %v25_v2  ;;  %v37_v12 = vunpack.c.l.bf16 %v26_v7  ;;  %v38_v13 = vunpack.c.h.bf16 %v26_v7  ;;  %v29_v14 = vld [vmem:[#allocation2 + $0x30] sm:$0xff]  ;;  %v30_v15 = vld [vmem:[#allocation2 + $0x38] sm:$0xff]  ;;  %s108_s0 = scalar_lea.vmem %s69_s21, 2048  ;;  %p113_p9 = scmp.lt.s32.totalorder %s69_s21, %s69_s21 }
  0x16   :  { %47 = vst [vmem:[#allocation5] sm:$0xff] %v31_v3  ;;  %48 = vst [vmem:[#allocation5 + $0x8] sm:$0xff] %v32_v4  ;;  %v39_v16 = vunpack.c.l.bf16 %v27_v8  ;;  %v40_v17 = vunpack.c.h.bf16 %v27_v8  ;;  %v41_v18 = vunpack.c.l.bf16 %v28_v9  ;;  %v42_v19 = vunpack.c.h.bf16 %v28_v9  ;;  %p109_p8 = scmp.ne.s32.totalorder %s69_s21, %s108_s0  ;;  %p114_p10 = scmp.lt.s32.totalorder %s108_s0, %s108_s0 }
  0x17   :  { %49 = vst [vmem:[#allocation5 + $0x10] sm:$0xff] %v33_v5  ;;  %50 = vst [vmem:[#allocation5 + $0x18] sm:$0xff] %v34_v6  ;;  %v43_v20 = vunpack.c.l.bf16 %v29_v14  ;;  %v44_v21 = vunpack.c.h.bf16 %v29_v14  ;;  %v45_v22 = vunpack.c.l.bf16 %v30_v15  ;;  %v46_v23 = vunpack.c.h.bf16 %v30_v15 }
  0x18   :  { %51 = vst [vmem:[#allocation5 + $0x20] sm:$0xff] %v35_v10  ;;  %52 = vst [vmem:[#allocation5 + $0x28] sm:$0xff] %v36_v11  ;;  %p115_p11 = por %p114_p10, %p113_p9 }
  0x19   :  { %53 = vst [vmem:[#allocation5 + $0x30] sm:$0xff] %v37_v12  ;;  %54 = vst [vmem:[#allocation5 + $0x38] sm:$0xff] %v38_v13 }
  0x1a   :  { %55 = vst [vmem:[#allocation5 + $0x40] sm:$0xff] %v39_v16  ;;  %56 = vst [vmem:[#allocation5 + $0x48] sm:$0xff] %v40_v17  ;;  %p116_p12 = pnand %p115_p11, %p109_p8 }
  0x1b   :  { %57 = vst [vmem:[#allocation5 + $0x50] sm:$0xff] %v41_v18  ;;  %58 = vst [vmem:[#allocation5 + $0x58] sm:$0xff] %v42_v19 }
  0x1c   :  { %59 = vst [vmem:[#allocation5 + $0x60] sm:$0xff] %v43_v20  ;;  %60 = vst [vmem:[#allocation5 + $0x68] sm:$0xff] %v44_v21 }
  0x1d   :  { %61 = vst [vmem:[#allocation5 + $0x70] sm:$0xff] %v45_v22  ;;  %62 = vst [vmem:[#allocation5 + $0x78] sm:$0xff] %v46_v23 }
  0x1e   :  { %119 = shalt.err (!%p116_p12)
}
  0x1f   :  { %s120_s24 = scalar_lea.hbm %s175_s1, 2048 }
  0x20   :  { %p121_p13 = scmp.ne.s32.totalorder %s175_s1, %s120_s24  ;;  %p124_p0 = scmp.lt.u32.totalorder %s120_s24, %s175_s1 }
  0x22   :  { %p126_p1 = pnand %p124_p0, %p121_p13 }
  0x24   :  { %129 = shalt.err (!%p126_p1)
}
  0x25   :  { %s138_s29 = smov 512   ;;  %s139_s30 = smov 32  }
  0x26   :  { %74 = dma.vmem_to_hbm [thread:$0]  %s69_s21, 2048, %s175_s1, [#allocation4], %s138_s29, %s138_s29, %s139_s30  }
  0x27   :  { %132 = dma.done.wait [#allocation4], 2048  }
  0x28   :  { %133 = vsyncadd [#allocation4], 4294965248 }
  0x29   :  { %78 = vsyncpa [#allocation3], 1 }
  0x2a   :  { %79 = vsyncpa [#allocation4], 1 }

</bundles_post_ra>
